<compile_context>
chip_gen: v7x
topology: tpu7x:2x2x1
jax: 0.10.0
libtpu: 0.0.40
codegen_flags: <defaults>
</compile_context>

<pallas_src>
import functools
import math

import jax
import jax.numpy as jnp
from jax.experimental import pallas as pl
from jax.experimental.pallas import tpu as pltpu


def _pe_kernel(x_ref, age_ref, mask_ref, div_ref, phase_ref, bmat_ref, o_ref, *, max_len):
    x = x_ref[...]                                   # (tile, S*E)  native dtype
    age = age_ref[...]                               # (tile, S)    int32
    mask = mask_ref[...]                             # (tile, S)    int8 (0/1)

    # clamp(age, 0, max_len-1); only masked entries matter (others are zeroed below).
    age_f = jnp.clip(age, 0, max_len - 1).astype(jnp.float32)
    mask_f = mask.astype(jnp.float32)

    # Broadcast (tile, S) -> (tile, S*E) along lanes with a tiny 0/1 matrix
    # (bmat[s, j] = 1 iff j // E == s).  Exact for integer ages and 0/1 masks.
    bmat = bmat_ref[...]                             # (S, S*E) f32
    age_b = jnp.dot(age_f, bmat, preferred_element_type=jnp.float32)     # (tile, S*E)
    mask_b = jnp.dot(mask_f, bmat, preferred_element_type=jnp.float32)   # (tile, S*E)

    # pe[pos, e] = sin(pos*w[e])           (even e)
    #            = cos(pos*w[e]) = sin(pos*w[e] + pi/2)   (odd e)
    angle = age_b * div_ref[...] + phase_ref[...]    # (tile, S*E) f32
    pe = jnp.sin(angle)

    out = x.astype(jnp.float32) + mask_b * pe
    o_ref[...] = out.astype(o_ref.dtype)


def _pe_constants(seq_len, hidden_dim):
    """Per-lane frequency / phase vectors and the lane-broadcast matrix."""
    e = hidden_dim
    half = jnp.exp(jnp.arange(0, e, 2, dtype=jnp.float32)
                   * (-math.log(10000.0) / e))                       # (E/2,)
    div_full = jnp.repeat(half, 2)                                   # (E,)  w[e] = half[e//2]
    phase_full = jnp.where(jnp.arange(e) % 2 == 0,
                           0.0, math.pi / 2.0).astype(jnp.float32)   # (E,)
    div_flat = jnp.tile(div_full, seq_len)[None, :]                  # (1, S*E)
    phase_flat = jnp.tile(phase_full, seq_len)[None, :]              # (1, S*E)
    bmat = jnp.repeat(jnp.eye(seq_len, dtype=jnp.float32), e, axis=1)  # (S, S*E)
    return div_flat, phase_flat, bmat


def _choose_tile_bn(bn, se, itemsize):
    # ~512 KiB of x per block; with double-buffered in/out + f32 temps this stays
    # at a few MiB of VMEM on every generation (incl. v7x's 64 MiB).
    target = max(8, (512 * 1024) // max(1, se * itemsize))
    tile = min(bn, target, 1024)
    if bn >= 16:
        # keep >=2 grid steps so v7x's two TensorCores both get work
        tile = min(tile, ((bn // 2 + 7) // 8) * 8)
    if tile >= 8:
        tile = (tile // 8) * 8      # sublane alignment
    return max(1, tile)


def positional_encoding_forward(x, age, mask, *, max_len=1000, tile_bn=None):
    """
    x:    (B, N, S, E) float (any float dtype; kept native end-to-end)
    age:  (B, N, S)    numeric (cast to int32, like torch .long())
    mask: (B, N, S)    bool
    returns (B, N, S, E), x.dtype:  out = x + mask * pe[clamp(age, 0, max_len-1)]
    """
    B, N, S, E = x.shape
    BN = B * N
    SE = S * E

    x2 = x.reshape(BN, SE)                           # lane-dense, native dtype (free reshape)
    age2 = age.reshape(BN, S).astype(jnp.int32)
    mask2 = mask.reshape(BN, S).astype(jnp.int8)

    div_flat, phase_flat, bmat = _pe_constants(S, E)

    if tile_bn is None:
        tile_bn = _choose_tile_bn(BN, SE, x2.dtype.itemsize)
    tile_bn = min(tile_bn, BN)
    grid = (pl.cdiv(BN, tile_bn),)

    kernel = functools.partial(_pe_kernel, max_len=max_len)

    itemsize = x2.dtype.itemsize
    cost = pl.CostEstimate(
        flops=3 * BN * SE + 2 * (2 * BN * S * SE),   # elementwise + 2 tiny broadcast matmuls
        transcendentals=BN * SE,                     # one sin per output element
        bytes_accessed=2 * BN * SE * itemsize + BN * S * (4 + 1),
    )

    out = pl.pallas_call(
        kernel,
        out_shape=jax.ShapeDtypeStruct((BN, SE), x.dtype),
        grid_spec=pltpu.PrefetchScalarGridSpec(
            num_scalar_prefetch=0,
            grid=grid,
            in_specs=[
                pl.BlockSpec((tile_bn, SE), lambda i: (i, 0)),   # x (lane-dense)
                pl.BlockSpec((tile_bn, S), lambda i: (i, 0)),    # age
                pl.BlockSpec((tile_bn, S), lambda i: (i, 0)),    # mask
                pl.BlockSpec((1, SE), lambda i: (0, 0)),         # per-lane frequency
                pl.BlockSpec((1, SE), lambda i: (0, 0)),         # per-lane phase (sin/cos)
                pl.BlockSpec((S, SE), lambda i: (0, 0)),         # lane-broadcast matrix
            ],
            out_specs=pl.BlockSpec((tile_bn, SE), lambda i: (i, 0)),
        ),
        compiler_params=pltpu.CompilerParams(
            dimension_semantics=("parallel",),
            vmem_limit_bytes=32 * 1024 * 1024,
        ),
        cost_estimate=cost,
    )(x2, age2, mask2, div_flat, phase_flat, bmat)

    return out.reshape(B, N, S, E)


# ----------------------------- self test -----------------------------------

def make_pe_table(hidden_dim, max_len):
    """Deterministic sin/cos table identical to the torch buffer (reference only)."""
    position = jnp.arange(max_len, dtype=jnp.float32)[:, None]
    div_term = jnp.exp(jnp.arange(0, hidden_dim, 2, dtype=jnp.float32)
                       * (-math.log(10000.0) / hidden_dim))
    pe = jnp.zeros((max_len, hidden_dim), dtype=jnp.float32)
    pe = pe.at[:, 0::2].set(jnp.sin(position * div_term))
    pe = pe.at[:, 1::2].set(jnp.cos(position * div_term))
    return pe


def _reference(x, age, mask, pe):
    """Pure-JAX reference mirroring the torch forward."""
    max_len = pe.shape[0]
    age_i = jnp.clip(age.astype(jnp.int32), 0, max_len - 1)
    return x + mask.astype(x.dtype)[..., None] * pe[age_i]


if __name__ == "__main__":
    B, N, S, E = 2, 4, 8, 32
    max_len = 1000

    key = jax.random.PRNGKey(0)
    kx, ka, km = jax.random.split(key, 3)

    x = jax.random.normal(kx, (B, N, S, E), dtype=jnp.float32)
    # ages: some negative / beyond max_len to exercise the clamp
    age = jax.random.randint(ka, (B, N, S), minval=-5, maxval=max_len + 10)
    mask = jax.random.bernoulli(km, p=0.6, shape=(B, N, S))

    out = positional_encoding_forward(x, age, mask, max_len=max_len)
    out = jax.block_until_ready(out)

    ref = _reference(x, age, mask, make_pe_table(E, max_len))
    assert out.shape == (B, N, S, E)
    assert out.dtype == x.dtype
    # analytic sin/cos vs the precomputed table agree to ~1e-4 abs for args up to max_len
    assert jnp.allclose(out, ref, atol=5e-4, rtol=1e-5), (
        f"mismatch vs reference, max abs diff = {jnp.max(jnp.abs(out - ref))}")

    print("KERNEL_OK")
</pallas_src>

<mosaic_0001>
module attributes {stable_mosaic.version = 11 : i64} {
  func.func @_pe_kernel(%arg0: i32, %arg1: memref<8x256xf32, #tpu.memory_space<vmem>>, %arg2: memref<8x8xi32, #tpu.memory_space<vmem>>, %arg3: memref<8x8xi8, #tpu.memory_space<vmem>>, %arg4: memref<1x256xf32, #tpu.memory_space<vmem>>, %arg5: memref<1x256xf32, #tpu.memory_space<vmem>>, %arg6: memref<8x256xf32, #tpu.memory_space<vmem>>, %arg7: memref<8x256xf32, #tpu.memory_space<vmem>>) attributes {dimension_semantics = [#tpu.dimension_semantics<parallel>], iteration_bounds = array<i64: 1>, scalar_prefetch = 0 : i64, scratch_operands = 0 : i64, tpu.core_type = #tpu.core_type<tc>, window_params = [{transform_indices = @transform_0, window_bounds = array<i64: 8, 256>}, {transform_indices = @transform_1, window_bounds = array<i64: 8, 8>}, {transform_indices = @transform_2, window_bounds = array<i64: 8, 8>}, {pipeline_mode = #tpu.pipeline_mode<synchronous>, transform_indices = @transform_3, window_bounds = array<i64: 1, 256>}, {pipeline_mode = #tpu.pipeline_mode<synchronous>, transform_indices = @transform_4, window_bounds = array<i64: 1, 256>}, {pipeline_mode = #tpu.pipeline_mode<synchronous>, transform_indices = @transform_5, window_bounds = array<i64: 8, 256>}, {transform_indices = @transform_6, window_bounds = array<i64: 8, 256>}]} {
    %c0 = arith.constant 0 : index
    %c0_0 = arith.constant 0 : index
    %0 = vector.load %arg1[%c0, %c0_0] : memref<8x256xf32, #tpu.memory_space<vmem>>, vector<8x256xf32>
    %c0_1 = arith.constant 0 : index
    %c0_2 = arith.constant 0 : index
    %1 = vector.load %arg2[%c0_1, %c0_2] : memref<8x8xi32, #tpu.memory_space<vmem>>, vector<8x8xi32>
    %c0_3 = arith.constant 0 : index
    %c0_4 = arith.constant 0 : index
    %2 = vector.load %arg3[%c0_3, %c0_4] : memref<8x8xi8, #tpu.memory_space<vmem>>, vector<8x8xi8>
    %c0_i32 = arith.constant 0 : i32
    %c999_i32 = arith.constant 999 : i32
    %3 = vector.broadcast %c0_i32 : i32 to vector<8x8xi32>
    %4 = arith.maxsi %3, %1 : vector<8x8xi32>
    %5 = vector.broadcast %c999_i32 : i32 to vector<8x8xi32>
    %6 = arith.minsi %5, %4 : vector<8x8xi32>
    %7 = arith.sitofp %6 : vector<8x8xi32> to vector<8x8xf32>
    %8 = arith.sitofp %2 : vector<8x8xi8> to vector<8x8xf32>
    %c0_5 = arith.constant 0 : index
    %c0_6 = arith.constant 0 : index
    %9 = vector.load %arg6[%c0_5, %c0_6] : memref<8x256xf32, #tpu.memory_space<vmem>>, vector<8x256xf32>
    %cst = arith.constant dense<0.000000e+00> : vector<8x256xf32>
    %10 = tpu.matmul %7, %9, %cst {dimension_numbers = #tpu.dot_dimension_numbers<[1], [0], [0], [1], [0, 0, 1, 1], [], []>} : vector<8x8xf32>, vector<8x256xf32>, vector<8x256xf32> -> vector<8x256xf32>
    %cst_7 = arith.constant dense<0.000000e+00> : vector<8x256xf32>
    %11 = tpu.matmul %8, %9, %cst_7 {dimension_numbers = #tpu.dot_dimension_numbers<[1], [0], [0], [1], [0, 0, 1, 1], [], []>} : vector<8x8xf32>, vector<8x256xf32>, vector<8x256xf32> -> vector<8x256xf32>
    %c0_8 = arith.constant 0 : index
    %c0_9 = arith.constant 0 : index
    %12 = vector.load %arg4[%c0_8, %c0_9] : memref<1x256xf32, #tpu.memory_space<vmem>>, vector<1x256xf32>
    %13 = vector.broadcast %12 : vector<1x256xf32> to vector<8x256xf32>
    %14 = arith.mulf %10, %13 : vector<8x256xf32>
    %c0_10 = arith.constant 0 : index
    %c0_11 = arith.constant 0 : index
    %15 = vector.load %arg5[%c0_10, %c0_11] : memref<1x256xf32, #tpu.memory_space<vmem>>, vector<1x256xf32>
    %16 = vector.broadcast %15 : vector<1x256xf32> to vector<8x256xf32>
    %17 = arith.addf %14, %16 : vector<8x256xf32>
    %18 = math.sin %17 : vector<8x256xf32>
    %19 = arith.mulf %11, %18 : vector<8x256xf32>
    %20 = arith.addf %0, %19 : vector<8x256xf32>
    %c0_12 = arith.constant 0 : index
    %c0_13 = arith.constant 0 : index
    %21 = vector.load %arg7[%c0_12, %c0_13] : memref<8x256xf32, #tpu.memory_space<vmem>>, vector<8x256xf32>
    tpu.vector_store %arg7[%c0_12, %c0_13], %20 {strides = array<i32>} : memref<8x256xf32, #tpu.memory_space<vmem>>, vector<8x256xf32>,
    return
  }
  func.func @transform_0(%arg0: i32) -> (i32, i32) {
    %c0_i32 = arith.constant 0 : i32
    %c0_i32_0 = arith.constant 0 : i32
    return %arg0, %c0_i32 : i32, i32
  }
  func.func @transform_1(%arg0: i32) -> (i32, i32) {
    %c0_i32 = arith.constant 0 : i32
    %c0_i32_0 = arith.constant 0 : i32
    return %arg0, %c0_i32 : i32, i32
  }
  func.func @transform_2(%arg0: i32) -> (i32, i32) {
    %c0_i32 = arith.constant 0 : i32
    %c0_i32_0 = arith.constant 0 : i32
    return %arg0, %c0_i32 : i32, i32
  }
  func.func @transform_3(%arg0: i32) -> (i32, i32) {
    %c0_i32 = arith.constant 0 : i32
    %c0_i32_0 = arith.constant 0 : i32
    %c0_i32_1 = arith.constant 0 : i32
    return %c0_i32, %c0_i32_0 : i32, i32
  }
  func.func @transform_4(%arg0: i32) -> (i32, i32) {
    %c0_i32 = arith.constant 0 : i32
    %c0_i32_0 = arith.constant 0 : i32
    %c0_i32_1 = arith.constant 0 : i32
    return %c0_i32, %c0_i32_0 : i32, i32
  }
  func.func @transform_5(%arg0: i32) -> (i32, i32) {
    %c0_i32 = arith.constant 0 : i32
    %c0_i32_0 = arith.constant 0 : i32
    %c0_i32_1 = arith.constant 0 : i32
    return %c0_i32, %c0_i32_0 : i32, i32
  }
  func.func @transform_6(%arg0: i32) -> (i32, i32) {
    %c0_i32 = arith.constant 0 : i32
    %c0_i32_0 = arith.constant 0 : i32
    return %arg0, %c0_i32 : i32, i32
  }
}

</mosaic_0001>

<bundles_post_ra>
// kernel: tpu_custom_call.1
= control target key start
LH: loop header
LB: loop body
LE: loop exit
PB: predicated region body
PF: predicated region fallthrough
CT: control target
= control target key end

     0   :  { %11 = vsyncpa [#allocation3], 0  ;;  %s841_s0 = inlined_call_operand.hbm [shape: f32[8,256], index: 0, kind: input, shape index: {}]   ;;  %s842_s1 = inlined_call_operand.hbm [shape: s32[8,8], index: 1, kind: input, shape index: {}]   ;;  %s843_s2 = inlined_call_operand.vmem [shape: s8[8,8], index: 2, kind: input, shape index: {}]   ;;  %s844_s3 = inlined_call_operand.hbm [shape: f32[1,256], index: 3, kind: input, shape index: {}]   ;;  %s845_s4 = inlined_call_operand.hbm [shape: f32[1,256], index: 4, kind: input, shape index: {}]   ;;  %s846_s5 = inlined_call_operand.vmem [shape: f32[8,256], index: 5, kind: input, shape index: {}]   ;;  %s847_s6 = inlined_call_operand.hbm [shape: f32[8,256], index: 6, kind: output, shape index: {}]  }
   0x1   :  { %12 = vsyncpa [#allocation6], 0 }
   0x2   :  { %13 = vsyncpa [#allocation9], 0 }
   0x3   :  { %14 = vsyncpa [#allocation4], 0  ;;  %s648_s21 = smov [#allocation5]   ;;  %s649_s23 = smov [#allocation2]  }
   0x4   :  { %s31_s22 = sshll.u32 %s648_s21, 4  ;;  %s21_s24 = sshll.u32 %s649_s23, 4  ;;  %s32_s22 = int_to_ptr.vmem [resolvable:$true] %s31_s22  ;;  %s22_s24 = int_to_ptr.vmem [resolvable:$true] %s21_s24 }
   0x5   :  { %s530_s27 = scalar_lea.hbm %s842_s1, 128 }
   0x6   :  { %p531_p0 = scmp.ne.s32.totalorder %s842_s1, %s530_s27  ;;  %p534_p1 = scmp.lt.u32.totalorder %s530_s27, %s842_s1 }
   0x8   :  { %p536_p2 = pnand %p534_p1, %p531_p0 }
   0xa   :  { %539 = shalt.err (!%p536_p2)
}
   0xb   :  { %s540_s8 = scalar_lea.vmem %s32_s22, 128  ;;  %p545_p4 = scmp.lt.s32.totalorder %s32_s22, %s32_s22 }
   0xc   :  { %p541_p3 = scmp.ne.s32.totalorder %s32_s22, %s540_s8  ;;  %p546_p5 = scmp.lt.s32.totalorder %s540_s8, %s540_s8 }
   0xe   :  { %p547_p6 = por %p546_p5, %p545_p4 }
  0x10   :  { %p548_p7 = pnand %p547_p6, %p541_p3 }
  0x12   :  { %551 = shalt.err (!%p548_p7)
}
  0x13   :  { %34 = dma.hbm_to_vmem [thread:$0]  %s842_s1, 128, %s32_s22, [#allocation6]  }
  0x14   :  { %s552_s13 = scalar_lea.hbm %s841_s0, 256 }
  0x15   :  { %p553_p8 = scmp.ne.s32.totalorder %s841_s0, %s552_s13  ;;  %p556_p9 = scmp.lt.u32.totalorder %s552_s13, %s841_s0 }
  0x17   :  { %p558_p10 = pnand %p556_p9, %p553_p8 }
  0x19   :  { %561 = shalt.err (!%p558_p10)
}
  0x1a   :  { %s562_s18 = scalar_lea.vmem %s22_s24, 256  ;;  %p567_p12 = scmp.lt.s32.totalorder %s22_s24, %s22_s24 }
  0x1b   :  { %p563_p11 = scmp.ne.s32.totalorder %s22_s24, %s562_s18  ;;  %p568_p13 = scmp.lt.s32.totalorder %s562_s18, %s562_s18 }
  0x1d   :  { %p569_p0 = por %p568_p13, %p567_p12 }
  0x1f   :  { %p570_p1 = pnand %p569_p0, %p563_p11 }
  0x21   :  { %573 = shalt.err (!%p570_p1)
}
  0x22   :  { %24 = dma.hbm_to_vmem [thread:$0]  %s841_s0, 256, %s22_s24, [#allocation3]  }
  0x23   :  { %s650_s20 = smov [#allocation7]   ;;  %s651_s22 = smov [#allocation8]  }
  0x24   :  { %s43_s21 = sshll.u32 %s650_s20, 4  ;;  %s53_s23 = sshll.u32 %s651_s22, 4  ;;  %s44_s21 = int_to_ptr.vmem [resolvable:$true] %s43_s21  ;;  %s54_s23 = int_to_ptr.vmem [resolvable:$true] %s53_s23 }
  0x25   :  { %s574_s27 = scalar_lea.hbm %s844_s3, 32 }
  0x26   :  { %p575_p2 = scmp.ne.s32.totalorder %s844_s3, %s574_s27  ;;  %p578_p3 = scmp.lt.u32.totalorder %s574_s27, %s844_s3 }
  0x28   :  { %p580_p4 = pnand %p578_p3, %p575_p2 }
  0x2a   :  { %583 = shalt.err (!%p580_p4)
}
  0x2b   :  { %s584_s0 = scalar_lea.vmem %s44_s21, 32  ;;  %p589_p6 = scmp.lt.s32.totalorder %s44_s21, %s44_s21 }
  0x2c   :  { %p585_p5 = scmp.ne.s32.totalorder %s44_s21, %s584_s0  ;;  %p590_p7 = scmp.lt.s32.totalorder %s584_s0, %s584_s0 }
  0x2e   :  { %p591_p8 = por %p590_p7, %p589_p6 }
  0x30   :  { %p592_p9 = pnand %p591_p8, %p585_p5 }
  0x32   :  { %595 = shalt.err (!%p592_p9)
}
  0x33   :  { %46 = dma.hbm_to_vmem [thread:$0]  %s844_s3, 32, %s44_s21, [#allocation6]  }
  0x34   :  { %s596_s11 = scalar_lea.hbm %s845_s4, 32 }
  0x35   :  { %p597_p10 = scmp.ne.s32.totalorder %s845_s4, %s596_s11  ;;  %p600_p11 = scmp.lt.u32.totalorder %s596_s11, %s845_s4 }
  0x37   :  { %p602_p12 = pnand %p600_p11, %p597_p10 }
  0x39   :  { %605 = shalt.err (!%p602_p12)
}
  0x3a   :  { %s606_s16 = scalar_lea.vmem %s54_s23, 32  ;;  %p611_p0 = scmp.lt.s32.totalorder %s54_s23, %s54_s23 }
  0x3b   :  { %p607_p13 = scmp.ne.s32.totalorder %s54_s23, %s606_s16  ;;  %p612_p1 = scmp.lt.s32.totalorder %s606_s16, %s606_s16 }
  0x3d   :  { %p613_p2 = por %p612_p1, %p611_p0 }
  0x3f   :  { %p614_p3 = pnand %p613_p2, %p607_p13 }
  0x41   :  { %617 = shalt.err (!%p614_p3)
}
  0x42   :  { %56 = dma.hbm_to_vmem [thread:$0]  %s845_s4, 32, %s54_s23, [#allocation9]  }
  0x43   :  { %640 = dma.done.wait [#allocation3], 256  }
  0x44   :  { %641 = vsyncadd [#allocation3], 4294967040 }
  0x45   :  { %642 = dma.done.wait [#allocation6], 160  }
  0x46   :  { %643 = vsyncadd [#allocation6], 4294967136 }
  0x47   :  { %644 = dma.done.wait [#allocation9], 32  }
  0x48   :  { %645 = vsyncadd [#allocation9], 4294967264  ;;  %v652_v0 = vmov 0.0   ;;  %v83_v1 = vld [vmem:[%s846_s5 + $0x8] sm:$0xff]  ;;  %v82_v2 = vld [vmem:[%s846_s5] sm:$0xff]  ;;  %vm84_vm2 = vcmask 64512   ;;  %v235_v10 = vlaneseq }
  0x49   :  { %152 = vmatprep.mubr.f32.mxu0 %v652_v0  ;;  %226 = vmatprep.mubr.f32.mxu1 %v652_v0  ;;  %v73_v3 = vld [vmem:[#allocation5] sm:$0xff]  ;;  %v74_v4 = vld [vmem:[%s843_s2] sm:$0x3]  ;;  %v233_v13 = vld [vmem:[#allocation7] sm:$0x3]  ;;  %s659_s2 = smov [#allocation10]  }
  0x4a   :  { %88 = vmatprep.subr.mxu0 %v83_v1  ;;  %vm75_vm0 = vcmp.gt.s32.totalorder %v73_v3, 0  ;;  %162 = vmatprep.subr.mxu1 %v83_v1  ;;  %v80_v6 = vunpack.c.0.s8 %v74_v4  ;;  %v236_v11 = vshrl.u32 %v235_v10, 7  ;;  %v247_v15 = vld [vmem:[#allocation8] sm:$0x3]  ;;  %v653_v50 = vmov 2102212464  }
  0x4b   :  { %89 = vmatpush1.msra.mxu0 %v82_v2  ;;  %v76_v5 = vsel %vm75_vm0, %v73_v3, 0  ;;  %163 = vmatpush1.msra.mxu1 %v82_v2  ;;  %v654_v52 = vmov 920167782   ;;  %v655_v56 = vmov 1326507024   ;;  %s481_s5 = sshll.u32 %s659_s2, 4  ;;  %s482_s5 = int_to_ptr.vmem [resolvable:$true] %s481_s5 }
  0x4c   :  { %vm77_vm1 = vcmp.lt.s32.totalorder %v76_v5, 999  ;;  %v81_v8 = vcvt.s32.f32 %v80_v6  ;;  %v237_v12 = vsub.s32 0, %v236_v11  ;;  %v241_v14 = vsub.s32 1, %v236_v11  ;;  %s618_s22 = scalar_lea.vmem %s482_s5, 256  ;;  %p623_p5 = scmp.lt.s32.totalorder %s482_s5, %s482_s5 }
  0x4d   :  { %v78_v7 = vsel %vm77_vm1, %v76_v5, 999  ;;  %v656_v62 = vmov 683565275   ;;  %v657_v0 = vmov 2475754826   ;;  %p619_p4 = scmp.ne.s32.totalorder %s482_s5, %s618_s22  ;;  %p624_p6 = scmp.lt.s32.totalorder %s618_s22, %s618_s22 }
  0x4e   :  { %v79_v9 = vcvt.s32.f32 %v78_v7  ;;  %493 = vmatmul.mubr.msk.f32.vlgmr.msra.gmra.mrb[0].mxu1 %vm84_vm2, %v81_v8  ;;  %v238_v16 = vrot.slane %v233_v13, %v237_v12  ;;  %v242_v17 = vrot.slane %v233_v13, %v241_v14  ;;  %v252_v18 = vrot.slane %v247_v15, %v237_v12 }
  0x4f   :  { %v256_v21 = vrot.slane %v247_v15, %v241_v14  ;;  %v658_v5 = vmov 2131351028   ;;  %p625_p7 = por %p624_p6, %p623_p5 }
  0x50   :  { %492 = vmatmul.mubr.msk.f32.vlgmr.msra.gmra.mrb[0].mxu0 %vm84_vm2, %v79_v9 }
  0x51   :  { %p626_p8 = pnand %p625_p7, %p619_p4 }
 0x121   :  { %v752_v19 = vpop.f32.mrb[0].mxu1 }
 0x122   :  { %v754_v22 = vpop.f32.mrb[1].mxu1 }
 0x123   :  { %v154_v20 = vpop.f32.mrb[0].mxu0 }
 0x124   :  { %v245_v23 = vmul.f32 %v238_v16, %v154_v20  ;;  %v156_v24 = vpop.f32.mrb[1].mxu0 }
 0x125   :  { %v246_v25 = vmul.f32 %v242_v17, %v156_v24 }
 0x126   :  { %v756_v26 = vadd.f32 %v252_v18, %v245_v23 }
 0x127   :  { %v758_v27 = vadd.f32 %v256_v21, %v246_v25 }
 0x128   :  { %v264_v28 = vand.u32 2139095040, %v756_v26  ;;  %v261_v29 = vand.u32 2147483647, %v756_v26  ;;  %vm263_vm1 = vcmp.lt.s32.totalorder %v756_v26, 0 }
 0x129   :  { %v368_v30 = vand.u32 2139095040, %v758_v27  ;;  %v365_v35 = vand.u32 2147483647, %v758_v27 }
 0x12a   :  { %v265_v31 = vshrl.u32 %v264_v28, 23  ;;  %v268_v34 = vand.u32 8388607, %v261_v29  ;;  %vm262_vm2 = vcmp.le.f32.partialorder %v261_v29, 0.7853982 }
 0x12b   :  { %v369_v32 = vshrl.u32 %v368_v30, 23  ;;  %v768_v40 = vand.u32 8388607, %v365_v35 }
 0x12c   :  { %v494_v33 = vadd.s32 4294967169, %v265_v31  ;;  %v269_v39 = vor.u32 8388608, %v268_v34 }
 0x12d   :  { %v498_v36 = vadd.s32 4294967169, %v369_v32  ;;  %v373_v49 = vor.u32 8388608, %v768_v40 }
 0x12e   :  { %v271_v37 = vadd.s32 1, %v494_v33  ;;  %v772_v48 = vshll.u32 %v269_v39, 8 }
 0x12f   :  { %v375_v38 = vadd.s32 1, %v498_v36 }
 0x130   :  { %vm272_vm3 = vcmp.gt.s32.totalorder %v271_v37, 0 }
 0x131   :  { %v273_v41 = vsel %vm272_vm3, %v271_v37, 0  ;;  %vm376_vm4 = vcmp.gt.s32.totalorder %v375_v38, 0  ;;  %vm367_vm3 = vcmp.lt.s32.totalorder %v758_v27, 0 }
 0x132   :  { %v274_v42 = vshrl.u32 %v273_v41, 5  ;;  %v275_v43 = vand.u32 31, %v273_v41  ;;  %v377_v44 = vsel %vm376_vm4, %v375_v38, 0  ;;  %vm366_vm4 = vcmp.le.f32.partialorder %v365_v35, 0.7853982 }
 0x133   :  { %v379_v45 = vand.u32 31, %v377_v44  ;;  %v770_v47 = vshrl.u32 %v377_v44, 5 }
 0x134   :  { %v276_v46 = vsub.s32 32, %v275_v43  ;;  %v287_v51 = vshll.u32 %v653_v50, %v275_v43  ;;  %v290_v53 = vshll.u32 %v654_v52, %v275_v43  ;;  %vm296_vm5 = vcmp.lt.s32.totalorder %v274_v42, 4 }
 0x135   :  { %v380_v54 = vsub.s32 32, %v379_v45  ;;  %v391_v58 = vshll.u32 %v653_v50, %v379_v45  ;;  %v394_v59 = vshll.u32 %v654_v52, %v379_v45  ;;  %v278_v63 = vshll.u32 %v656_v62, %v275_v43 }
 0x136   :  { %v288_v55 = vshrl.u32 %v654_v52, %v276_v46  ;;  %v291_v57 = vshrl.u32 %v655_v56, %v276_v46  ;;  %v279_v1 = vshrl.u32 %v657_v0, %v276_v46  ;;  %v281_v4 = vshll.u32 %v657_v0, %v275_v43 }
 0x137   :  { %v392_v60 = vshrl.u32 %v654_v52, %v380_v54  ;;  %v395_v61 = vshrl.u32 %v655_v56, %v380_v54  ;;  %v282_v6 = vshrl.u32 %v658_v5, %v276_v46  ;;  %vm400_vm6 = vcmp.lt.s32.totalorder %v770_v47, 4 }
 0x138   :  { %v289_v2 = vor.u32 %v288_v55, %v287_v51  ;;  %v292_v3 = vor.u32 %v291_v57, %v290_v53  ;;  %v280_v7 = vor.u32 %v279_v1, %v278_v63  ;;  %v284_v8 = vshll.u32 %v658_v5, %v275_v43 }
 0x139   :  { %v285_v9 = vshrl.u32 %v653_v50, %v276_v46  ;;  %v277_v12 = vshrl.u32 %v656_v62, %v276_v46  ;;  %v283_v13 = vor.u32 %v282_v6, %v281_v4  ;;  %v393_v14 = vor.u32 %v392_v60, %v391_v58 }
 0x13a   :  { %v302_v10 = vsel %vm296_vm5, %v289_v2, 920167782  ;;  %v306_v11 = vsel %vm296_vm5, %v292_v3, 1326507024  ;;  %v396_v15 = vor.u32 %v395_v61, %v394_v59  ;;  %vm293_vm7 = vcmp.lt.s32.totalorder %v274_v42, 1 }
 0x13b   :  { %v286_v16 = vor.u32 %v285_v9, %v284_v8  ;;  %vm294_vm8 = vcmp.lt.s32.totalorder %v274_v42, 2  ;;  %vm295_vm9 = vcmp.lt.s32.totalorder %v274_v42, 3  ;;  %v297_v17 = vsel %vm293_vm7, %v277_v12, %v280_v7 }
 0x13c   :  { %v301_v18 = vsel %vm293_vm7, %v280_v7, %v283_v13  ;;  %v307_v24 = vsel %vm295_vm9, %v289_v2, %v306_v11  ;;  %v382_v31 = vshll.u32 %v656_v62, %v379_v45  ;;  %v383_v36 = vshrl.u32 %v657_v0, %v380_v54 }
 0x13d   :  { %v298_v20 = vsel %vm296_vm5, %v286_v16, 2102212464  ;;  %v303_v21 = vsel %vm295_vm9, %v286_v16, %v302_v10  ;;  %v305_v23 = vsel %vm293_vm7, %v283_v13, %v286_v16  ;;  %v410_v37 = vsel %vm400_vm6, %v396_v15, 1326507024 }
 0x13e   :  { %v299_v25 = vsel %vm295_vm9, %v283_v13, %v298_v20  ;;  %v304_v28 = vsel %vm294_vm8, %v301_v18, %v303_v21  ;;  %v308_v30 = vsel %vm294_vm8, %v305_v23, %v307_v24  ;;  %v385_v40 = vshll.u32 %v657_v0, %v379_v45 }
 0x13f   :  { %v300_v32 = vsel %vm294_vm8, %v297_v17, %v299_v25  ;;  %v780_v33 = vmul.u32.u64.low %v772_v48, %v308_v30  ;;  %v781_v34 = vmul.u32.u64.high %v772_v48, %v308_v30, %v780_v33  ;;  %v384_v41 = vor.u32 %v383_v36, %v382_v31 }
 0x140   :  { %v786_v38 = vmul.u32.u64.low %v772_v48, %v304_v28  ;;  %v787_v39 = vmul.u32.u64.high %v772_v48, %v304_v28, %v786_v38  ;;  %v386_v42 = vshrl.u32 %v658_v5, %v380_v54  ;;  %v388_v43 = vshll.u32 %v658_v5, %v379_v45 }
 0x141   :  { %v389_v44 = vshrl.u32 %v653_v50, %v380_v54  ;;  %v406_v46 = vsel %vm400_vm6, %v393_v14, 920167782  ;;  %v316_v51 = vmul.u32 %v772_v48, %v300_v32  ;;  %v381_v52 = vshrl.u32 %v656_v62, %v380_v54 }
 0x142   :  { %v413_v53 = vshll.u32 %v373_v49, 8  ;;  %vm318_vm10 = vc.u32 %v781_v34, %v786_v38  ;;  %v387_v55 = vor.u32 %v386_v42, %v385_v40  ;;  %vm399_vm11 = vcmp.lt.s32.totalorder %v770_v47, 3 }
 0x143   :  { %v390_v56 = vor.u32 %v389_v44, %v388_v43  ;;  %v319_v57 = vadd.s32 1, %v787_v39  ;;  %vm397_vm12 = vcmp.lt.s32.totalorder %v770_v47, 1  ;;  %vm398_vm13 = vcmp.lt.s32.totalorder %v770_v47, 2 }
 0x144   :  { %v411_v45 = vsel %vm399_vm11, %v393_v14, %v410_v37  ;;  %v405_v58 = vsel %vm397_vm12, %v384_v41, %v387_v55  ;;  %v401_v59 = vsel %vm397_vm12, %v381_v52, %v384_v41  ;;  %v317_v24 = vadd.s32 %v786_v38, %v781_v34 }
 0x145   :  { %v402_v50 = vsel %vm400_vm6, %v390_v56, 2102212464  ;;  %v407_v48 = vsel %vm399_vm11, %v390_v56, %v406_v46  ;;  %v409_v54 = vsel %vm397_vm12, %v387_v55, %v390_v56  ;;  %v320_v49 = vsel %vm318_vm10, %v319_v57, %v787_v39 }
 0x146   :  { %v408_v60 = vsel %vm398_vm13, %v405_v58, %v407_v48  ;;  %v412_v61 = vsel %vm398_vm13, %v409_v54, %v411_v45  ;;  %v321_v62 = vadd.s32 %v320_v49, %v316_v51  ;;  %v403_v63 = vsel %vm399_vm11, %v387_v55, %v402_v50 }
 0x147   :  { %v804_v0 = vmul.u32.u64.low %v413_v53, %v412_v61  ;;  %v805_v1 = vmul.u32.u64.high %v413_v53, %v412_v61, %v804_v0  ;;  %v807_v2 = vmul.u32.u64.low %v413_v53, %v408_v60  ;;  %v808_v3 = vmul.u32.u64.high %v413_v53, %v408_v60, %v807_v2 }
 0x148   :  { %v322_v4 = vadd.s32 536870912, %v321_v62  ;;  %v404_v5 = vsel %vm398_vm13, %v401_v59, %v403_v63  ;;  %vm353_vm8 = vweird.f32 %v756_v26  ;;  %vm457_vm12 = vweird.f32 %v758_v27 }
 0x149   :  { %vm422_vm14 = vc.u32 %v805_v1, %v807_v2  ;;  %v423_v7 = vadd.s32 1, %v808_v3  ;;  %v420_v9 = vmul.u32 %v413_v53, %v404_v5  ;;  %v421_v46 = vadd.s32 %v807_v2, %v805_v1 }
 0x14a   :  { %v323_v6 = vshrl.u32 %v322_v4, 30 }
 0x14b   :  { %v424_v10 = vsel %vm422_vm14, %v423_v7, %v808_v3 }
 0x14c   :  { %v324_v8 = vshll.u32 %v323_v6, 30  ;;  %v425_v12 = vadd.s32 %v424_v10, %v420_v9  ;;  %v347_v38 = vsub.s32 4, %v323_v6 }
 0x14e   :  { %v325_v11 = vsub.s32 %v321_v62, %v324_v8  ;;  %v426_v14 = vadd.s32 536870912, %v425_v12  ;;  %v348_v48 = vsel %vm263_vm1, %v347_v38, %v323_v6 }
 0x14f   :  { %v350_v59 = vsel %vm262_vm2, 0, %v348_v48 }
 0x150   :  { %v327_v13 = vsub.s32 0, %v325_v11  ;;  %v427_v16 = vshrl.u32 %v426_v14, 30  ;;  %v354_v0 = vadd.s32 3, %v350_v59 }
 0x152   :  { %v495_v15 = vmin.u32 %v327_v13, %v325_v11  ;;  %v428_v18 = vshll.u32 %v427_v16, 30  ;;  %v451_v63 = vsub.s32 4, %v427_v16  ;;  %v355_v3 = vand.u32 3, %v354_v0  ;;  %v71_v13 = vld [vmem:[#allocation2] sm:$0xff] }
 0x154   :  { %v329_v17 = vclz %v495_v15  ;;  %v429_v47 = vsub.s32 %v425_v12, %v428_v18  ;;  %v452_v2 = vsel %vm367_vm3, %v451_v63, %v427_v16  ;;  %vm360_vm5 = vcmp.eq.s32.totalorder %v355_v3, 2 }
 0x155   :  { %v454_v6 = vsel %vm366_vm4, 0, %v452_v2  ;;  %vm357_vm6 = vcmp.eq.s32.totalorder %v355_v3, 0  ;;  %vm356_vm7 = vcmp.lt.s32.totalorder %v355_v3, 2 }
 0x156   :  { %v496_v20 = vadd.s32 4294967294, %v329_v17  ;;  %v431_v23 = vsub.s32 0, %v429_v47 }
 0x158   :  { %vm497_vm15 = vcmp.lt.s32.totalorder %v496_v20, 0  ;;  %v499_v30 = vmin.u32 %v431_v23, %v429_v47 }
 0x159   :  { %v332_v21 = vsel %vm497_vm15, 0, %v496_v20 }
 0x15a   :  { %v333_v25 = vsub.s32 32, %v332_v21  ;;  %v337_v28 = vsub.s32 4294967266, %v332_v21  ;;  %v334_v31 = vshll.u32 %v325_v11, %v332_v21  ;;  %v433_v36 = vclz %v499_v30 }
 0x15b   :  { %v458_v11 = vadd.s32 3, %v454_v6 }
 0x15c   :  { %v335_v32 = vshrl.u32 %v317_v24, %v333_v25  ;;  %v338_v33 = vadd.s32 127, %v337_v28  ;;  %v500_v40 = vadd.s32 4294967294, %v433_v36  ;;  %v72_v25 = vld [vmem:[#allocation2 + $0x8] sm:$0xff] }
 0x15d   :  { %v459_v16 = vand.u32 3, %v458_v11 }
 0x15e   :  { %v336_v37 = vor.u32 %v335_v32, %v334_v31  ;;  %v339_v39 = vshll.u32 %v338_v33, 23  ;;  %vm501_vm0 = vcmp.lt.s32.totalorder %v500_v40, 0 }
 0x15f   :  { %v436_v44 = vsel %vm501_vm0, 0, %v500_v40  ;;  %vm464_vm9 = vcmp.eq.s32.totalorder %v459_v16, 2  ;;  %vm461_vm10 = vcmp.eq.s32.totalorder %v459_v16, 0  ;;  %vm460_vm11 = vcmp.lt.s32.totalorder %v459_v16, 2 }
 0x160   :  { %v340_v41 = vor.u32 4788187, %v339_v39  ;;  %v343_v43 = vcvt.s32.f32 %v336_v37  ;;  %v437_v51 = vsub.s32 32, %v436_v44  ;;  %v441_v52 = vsub.s32 4294967266, %v436_v44 }
 0x161   :  { %v438_v53 = vshll.u32 %v429_v47, %v436_v44 }
 0x162   :  { %v341_v42 = vand.u32 2147483647, %v340_v41  ;;  %v439_v55 = vshrl.u32 %v421_v46, %v437_v51  ;;  %v442_v56 = vadd.s32 127, %v441_v52 }
 0x164   :  { %v344_v34 = vmul.f32 %v343_v43, %v341_v42  ;;  %v440_v45 = vor.u32 %v439_v55, %v438_v53  ;;  %v443_v50 = vshll.u32 %v442_v56, 23 }
 0x166   :  { %v345_v57 = vxor.u32 2147483648, %v344_v34  ;;  %v444_v49 = vor.u32 4788187, %v443_v50  ;;  %v447_v61 = vcvt.s32.f32 %v440_v45 }
 0x168   :  { %v346_v58 = vsel %vm263_vm1, %v345_v57, %v344_v34  ;;  %v445_v60 = vand.u32 2147483647, %v444_v49 }
 0x169   :  { %v349_v54 = vsel %vm262_vm2, %v756_v26, %v346_v58 }
 0x16a   :  { %522 = vcosq.f32 %v349_v54  ;;  %v448_v62 = vmul.f32 %v447_v61, %v445_v60 }
 0x16b   :  { %524 = vsinq.f32 %v349_v54 }
 0x16c   :  { %v449_v1 = vxor.u32 2147483648, %v448_v62 }
 0x16e   :  { %v450_v29 = vsel %vm367_vm3, %v449_v1, %v448_v62 }
 0x16f   :  { %v453_v4 = vsel %vm366_vm4, %v758_v27, %v450_v29 }
 0x170   :  { %526 = vcosq.f32 %v453_v4 }
 0x171   :  { %528 = vsinq.f32 %v453_v4 }
 0x174   :  { %v523_v5 = vpop.eup %522 }
 0x175   :  { %v525_v7 = vpop.eup %524  ;;  %v361_v8 = vxor.u32 2147483648, %v523_v5 }
 0x176   :  { %v358_v9 = vxor.u32 2147483648, %v525_v7 }
 0x177   :  { %v362_v10 = vsel %vm360_vm5, %v361_v8, %v525_v7 }
 0x178   :  { %v359_v12 = vsel %vm357_vm6, %v523_v5, %v358_v9 }
 0x179   :  { %v363_v35 = vsel %vm356_vm7, %v359_v12, %v362_v10 }
 0x17a   :  { %v364_v14 = vsel %vm353_vm8, nan, %v363_v35  ;;  %v527_v17 = vpop.eup %526 }
 0x17b   :  { %v469_v15 = vmul.f32 %v364_v14, %v752_v19  ;;  %v529_v20 = vpop.eup %528  ;;  %v465_v47 = vxor.u32 2147483648, %v527_v17 }
 0x17c   :  { %v462_v21 = vxor.u32 2147483648, %v529_v20 }
 0x17d   :  { %v471_v18 = vadd.f32 %v469_v15, %v71_v13  ;;  %v466_v23 = vsel %vm464_vm9, %v465_v47, %v529_v20 }
 0x17e   :  { %v463_v24 = vsel %vm461_vm10, %v527_v17, %v462_v21 }
 0x17f   :  { %473 = vst [vmem:[#allocation10] sm:$0xff] %v471_v18  ;;  %v467_v26 = vsel %vm460_vm11, %v463_v24, %v466_v23 }
 0x180   :  { %v468_v28 = vsel %vm457_vm12, nan, %v467_v26 }
 0x181   :  { %v470_v19 = vmul.f32 %v468_v28, %v754_v22 }
 0x183   :  { %v472_v30 = vadd.f32 %v470_v19, %v72_v25 }
 0x185   :  { %474 = vst [vmem:[#allocation10 + $0x8] sm:$0xff] %v472_v30 }
 0x186   :  { %629 = shalt.err (!%p626_p8)
}
 0x187   :  { %s630_s26 = scalar_lea.hbm %s847_s6, 256 }
 0x188   :  { %p631_p9 = scmp.ne.s32.totalorder %s847_s6, %s630_s26  ;;  %p634_p10 = scmp.lt.u32.totalorder %s630_s26, %s847_s6 }
 0x18a   :  { %p636_p11 = pnand %p634_p10, %p631_p9 }
 0x18c   :  { %639 = shalt.err (!%p636_p11)
}
 0x18d   :  { %484 = dma.vmem_to_hbm [thread:$0]  %s482_s5, 256, %s847_s6, [#allocation4]  }
 0x18e   :  { %646 = dma.done.wait [#allocation4], 256  }
 0x18f   :  { %647 = vsyncadd [#allocation4], 4294967040 }
 0x190   :  { %488 = vsyncpa [#allocation3], 1 }
 0x191   :  { %489 = vsyncpa [#allocation6], 1 }
 0x192   :  { %490 = vsyncpa [#allocation9], 1 }
 0x193   :  { %491 = vsyncpa [#allocation4], 1 }

</bundles_post_ra>
